<compile_context>
chip_gen: v6e
topology: v6e:2x2x1
jax: 0.10.0
libtpu: 0.0.40
codegen_flags: <defaults>
</compile_context>

<pallas_src>
import jax
import jax.numpy as jnp
from jax.experimental import pallas as pl
from jax.experimental.pallas import tpu as pltpu

BN_EPS = 1e-5  # nn.BatchNorm2d default eps


def _pcb_head_kernel(feat_ref, wconv_ref, bconv_ref, wfc_ref, bfc_ref,
                     feat_out_ref, logits_out_ref):
    # feat_ref: (n_tile, stripe_h, col_w, C) bf16 block of the NHWC feature map.
    x = feat_ref[...].astype(jnp.float32)

    # F.avg_pool2d over the stripe window == sum over spatial positions; the
    # 1/(stripe_h*col_w) scale is folded into the conv weight on the host.
    pooled = x.sum(axis=1).sum(axis=1)                          # [n_tile, C]

    # 1x1 Conv2d + eval-mode BatchNorm2d, pre-folded into w/b; weight already
    # transposed to [C, out_c_p] so the MXU consumes it in natural [K, N] layout.
    w = wconv_ref[0]                                            # [C, out_c_p]
    g = jax.lax.dot_general(pooled, w, (((1,), (0,)), ((), ())),
                            preferred_element_type=jnp.float32)
    g = jnp.maximum(g + bconv_ref[0], 0.0)                      # + bias, ReLU
    feat_out_ref[0] = g.astype(feat_out_ref.dtype)

    # Per-stripe Linear, weight pre-transposed to [out_c_p, nc_p].
    wfc = wfc_ref[0]
    logits = jax.lax.dot_general(g, wfc, (((1,), (0,)), ((), ())),
                                 preferred_element_type=jnp.float32)
    logits_out_ref[0] = (logits + bfc_ref[0]).astype(logits_out_ref.dtype)


def _round_up(x, m):
    return (x + m - 1) // m * m


def _pad_axis(x, axis, target):
    pad = target - x.shape[axis]
    if pad == 0:
        return x
    cfg = [(0, 0)] * x.ndim
    cfg[axis] = (0, pad)
    return jnp.pad(x, cfg)


def _fold_params(params, pool_size):
    """Fold eval-mode BN + the avg-pool scale into the 1x1 conv; pre-transpose weights."""
    scale = params["gamma"] * jax.lax.rsqrt(params["var"] + BN_EPS)    # [S, 1, out_c]
    # conv weight [S, out_c, C] -> [S, C, out_c], BN scale and 1/P folded in.
    w_eff = jnp.transpose(params["w_conv"], (0, 2, 1)) * (scale / pool_size)
    b_eff = (params["b_conv"] - params["mean"]) * scale + params["beta"]  # [S, 1, out_c]
    w_fc_t = jnp.transpose(params["w_fc"], (0, 2, 1))                    # [S, out_c, nc]
    return w_eff, b_eff, w_fc_t, params["b_fc"]


def pcb_head(feat_nhwc, params, num_stripes, num_cols=1, n_tile=None):
    """PCB head on the NHWC backbone feature map.

    feat_nhwc: [N, H, W, C] (any float dtype; cast to bf16 for the HBM read).
    params: original (unfolded) per-stripe conv/BN/fc parameters.
    Returns (local_feats [S, N, out_c], logits [S, N, num_classes]).
    """
    N, H, W, C = feat_nhwc.shape
    assert H % num_stripes == 0 and W % num_cols == 0
    sh, cw = H // num_stripes, W // num_cols
    S = num_stripes * num_cols
    out_c = params["w_conv"].shape[1]
    num_classes = params["w_fc"].shape[1]

    if n_tile is None:
        n_tile = N                       # at realistic N, use a multiple of 8 (e.g. 32)
    assert N % n_tile == 0

    # Fold BN + pooling scale, pre-transpose, and pad channel dims to lane width.
    w_eff, b_eff, w_fc_t, b_fc = _fold_params(params, pool_size=sh * cw)
    out_c_p = _round_up(out_c, 128)
    nc_p = _round_up(num_classes, 128)
    w_eff = _pad_axis(w_eff, -1, out_c_p)                   # [S, C, out_c_p]
    b_eff = _pad_axis(b_eff, -1, out_c_p)                   # [S, 1, out_c_p]
    w_fc_t = _pad_axis(_pad_axis(w_fc_t, -2, out_c_p), -1, nc_p)   # [S, out_c_p, nc_p]
    b_fc = _pad_axis(b_fc, -1, nc_p)                        # [S, 1, nc_p]

    feat_bf16 = feat_nhwc.astype(jnp.bfloat16)              # halve HBM read traffic

    grid = (num_stripes, num_cols, N // n_tile)

    in_specs = [
        # Stripe (i, j), batch tile b of the NHWC feature map -- no wrapper copy.
        # (num_cols > 1 requires col_w to be a multiple of 8 or equal to W.)
        pl.BlockSpec((n_tile, sh, cw, C), lambda i, j, b: (b, i, j, 0)),
        pl.BlockSpec((1, C, out_c_p), lambda i, j, b: (i * num_cols + j, 0, 0)),
        pl.BlockSpec((1, 1, out_c_p), lambda i, j, b: (i * num_cols + j, 0, 0)),
        pl.BlockSpec((1, out_c_p, nc_p), lambda i, j, b: (i * num_cols + j, 0, 0)),
        pl.BlockSpec((1, 1, nc_p), lambda i, j, b: (i * num_cols + j, 0, 0)),
    ]
    out_specs = [
        pl.BlockSpec((1, n_tile, out_c_p), lambda i, j, b: (i * num_cols + j, b, 0)),
        pl.BlockSpec((1, n_tile, nc_p), lambda i, j, b: (i * num_cols + j, b, 0)),
    ]
    out_shape = [
        jax.ShapeDtypeStruct((S, N, out_c_p), jnp.float32),
        jax.ShapeDtypeStruct((S, N, nc_p), jnp.float32),
    ]

    fn = pl.pallas_call(
        _pcb_head_kernel,
        out_shape=out_shape,
        grid_spec=pltpu.PrefetchScalarGridSpec(
            num_scalar_prefetch=0,
            grid=grid,
            in_specs=in_specs,
            out_specs=out_specs,
        ),
        compiler_params=pltpu.CompilerParams(
            dimension_semantics=("parallel", "parallel", "parallel")),
    )
    feats_p, logits_p = fn(feat_bf16, w_eff, b_eff, w_fc_t, b_fc)
    # Slice away the lane padding (no-op when already a multiple of 128).
    return feats_p[:, :, :out_c], logits_p[:, :, :num_classes]


def reference(feat_nhwc, params, num_stripes, num_cols):
    """Plain-JAX reference matching the PyTorch forward (eval-mode BN)."""
    N, H, W, C = feat_nhwc.shape
    sh, cw = H // num_stripes, W // num_cols
    x = feat_nhwc.astype(jnp.float32)
    feats, logits = [], []
    m = 0
    for i in range(num_stripes):
        for j in range(num_cols):
            stripe = x[:, i * sh:(i + 1) * sh, j * cw:(j + 1) * cw, :]
            pooled = jnp.mean(stripe, axis=(1, 2))                     # avg_pool2d
            g = pooled @ params["w_conv"][m].T + params["b_conv"][m]   # 1x1 conv
            inv_std = 1.0 / jnp.sqrt(params["var"][m] + BN_EPS)
            g = (g - params["mean"][m]) * inv_std * params["gamma"][m] + params["beta"][m]
            g = jnp.maximum(g, 0.0)
            feats.append(g)
            logits.append(g @ params["w_fc"][m].T + params["b_fc"][m])
            m += 1
    return jnp.stack(feats), jnp.stack(logits)


if __name__ == "__main__":
    # Small shapes consistent with the module's forward. The backbone feature
    # map is produced in NHWC (the natural TPU layout) -- no transposed copy.
    N, H, W, C = 2, 12, 4, 256
    num_stripes, num_cols = 6, 1
    out_c, num_classes = 64, 8          # deliberately < 128 to exercise lane padding
    S = num_stripes * num_cols

    key = jax.random.PRNGKey(0)
    ks = jax.random.split(key, 9)

    # bf16-quantized feature map (what the kernel reads); reference uses the same values.
    feat_nhwc = jax.random.normal(ks[0], (N, H, W, C), dtype=jnp.float32).astype(jnp.bfloat16)

    params = {
        # Conv2d(C->out_c, 1): weight [out_c, C, 1, 1] stored per stripe as [S, out_c, C]
        "w_conv": jax.random.normal(ks[1], (S, out_c, C), dtype=jnp.float32) * 0.02,
        "b_conv": jax.random.normal(ks[2], (S, 1, out_c), dtype=jnp.float32) * 0.01,
        # BatchNorm2d(out_c) affine params + running stats (eval-mode BN)
        "gamma": 1.0 + 0.1 * jax.random.normal(ks[3], (S, 1, out_c), dtype=jnp.float32),
        "beta": 0.1 * jax.random.normal(ks[4], (S, 1, out_c), dtype=jnp.float32),
        "mean": 0.05 * jax.random.normal(ks[5], (S, 1, out_c), dtype=jnp.float32),
        "var": 0.5 + jax.random.uniform(ks[6], (S, 1, out_c), dtype=jnp.float32),
        # Linear(out_c -> num_classes): init.normal(std=0.001), bias 0 (as in __init__)
        "w_fc": 0.001 * jax.random.normal(ks[7], (S, num_classes, out_c), dtype=jnp.float32),
        "b_fc": jnp.zeros((S, 1, num_classes), dtype=jnp.float32),
    }

    feats, logits = pcb_head(feat_nhwc, params, num_stripes, num_cols)
    feats = jax.block_until_ready(feats)
    logits = jax.block_until_ready(logits)

    ref_feats, ref_logits = reference(feat_nhwc, params, num_stripes, num_cols)
    assert jnp.allclose(feats, ref_feats, atol=1e-4, rtol=1e-3), \
        float(jnp.max(jnp.abs(feats - ref_feats)))
    assert jnp.allclose(logits, ref_logits, atol=1e-4, rtol=1e-3), \
        float(jnp.max(jnp.abs(logits - ref_logits)))

    # Match the module's return convention: lists of per-stripe [N, c] / [N, num_classes].
    local_feat_list = [feats[m] for m in range(S)]
    logits_list = [logits[m] for m in range(S)]
    assert local_feat_list[0].shape == (N, out_c)
    assert logits_list[0].shape == (N, num_classes)

    print("KERNEL_OK")
</pallas_src>

<mosaic_0001>
module attributes {stable_mosaic.version = 11 : i64} {
  func.func @_pcb_head_kernel(%arg0: i32, %arg1: i32, %arg2: i32, %arg3: memref<2x2x4x256xbf16, #tpu.memory_space<vmem>>, %arg4: memref<1x256x128xf32, #tpu.memory_space<vmem>>, %arg5: memref<1x1x128xf32, #tpu.memory_space<vmem>>, %arg6: memref<1x128x128xf32, #tpu.memory_space<vmem>>, %arg7: memref<1x1x128xf32, #tpu.memory_space<vmem>>, %arg8: memref<1x2x128xf32, #tpu.memory_space<vmem>>, %arg9: memref<1x2x128xf32, #tpu.memory_space<vmem>>) attributes {dimension_semantics = [#tpu.dimension_semantics<parallel>, #tpu.dimension_semantics<parallel>, #tpu.dimension_semantics<parallel>], iteration_bounds = array<i64: 6, 1, 1>, scalar_prefetch = 0 : i64, scratch_operands = 0 : i64, tpu.core_type = #tpu.core_type<tc>, window_params = [{transform_indices = @transform_0, window_bounds = array<i64: 2, 2, 4, 256>}, {transform_indices = @transform_1, window_bounds = array<i64: 1, 256, 128>}, {transform_indices = @transform_2, window_bounds = array<i64: 1, 1, 128>}, {transform_indices = @transform_3, window_bounds = array<i64: 1, 128, 128>}, {transform_indices = @transform_4, window_bounds = array<i64: 1, 1, 128>}, {transform_indices = @transform_5, window_bounds = array<i64: 1, 2, 128>}, {transform_indices = @transform_6, window_bounds = array<i64: 1, 2, 128>}]} {
    %c0 = arith.constant 0 : index
    %c0_0 = arith.constant 0 : index
    %c0_1 = arith.constant 0 : index
    %c0_2 = arith.constant 0 : index
    %0 = vector.load %arg3[%c0, %c0_0, %c0_1, %c0_2] : memref<2x2x4x256xbf16, #tpu.memory_space<vmem>>, vector<2x2x4x256xbf16>
    %1 = arith.extf %0 : vector<2x2x4x256xbf16> to vector<2x2x4x256xf32>
    %cst = arith.constant dense<0.000000e+00> : vector<2x4x256xf32>
    %2 = vector.multi_reduction <add>, %1, %cst [1] : vector<2x2x4x256xf32> to vector<2x4x256xf32>
    %cst_3 = arith.constant dense<0.000000e+00> : vector<2x256xf32>
    %3 = vector.multi_reduction <add>, %2, %cst_3 [1] : vector<2x4x256xf32> to vector<2x256xf32>
    %c0_4 = arith.constant 0 : index
    %c0_5 = arith.constant 0 : index
    %c0_6 = arith.constant 0 : index
    %4 = vector.load %arg4[%c0_4, %c0_5, %c0_6] : memref<1x256x128xf32, #tpu.memory_space<vmem>>, vector<1x256x128xf32>
    %5 = vector.shape_cast %4 : vector<1x256x128xf32> to vector<256x128xf32>
    %cst_7 = arith.constant dense<0.000000e+00> : vector<2x128xf32>
    %6 = tpu.matmul %3, %5, %cst_7 {dimension_numbers = #tpu.dot_dimension_numbers<[1], [0], [0], [1], [0, 0, 1, 1], [], []>} : vector<2x256xf32>, vector<256x128xf32>, vector<2x128xf32> -> vector<2x128xf32>
    %c0_8 = arith.constant 0 : index
    %c0_9 = arith.constant 0 : index
    %c0_10 = arith.constant 0 : index
    %7 = vector.load %arg5[%c0_8, %c0_9, %c0_10] : memref<1x1x128xf32, #tpu.memory_space<vmem>>, vector<1x1x128xf32>
    %8 = vector.shape_cast %7 : vector<1x1x128xf32> to vector<1x128xf32>
    %9 = vector.broadcast %8 : vector<1x128xf32> to vector<2x128xf32>
    %10 = arith.addf %6, %9 : vector<2x128xf32>
    %cst_11 = arith.constant 0.000000e+00 : f32
    %11 = vector.broadcast %cst_11 : f32 to vector<2x128xf32>
    %12 = arith.maximumf %10, %11 : vector<2x128xf32>
    %c0_12 = arith.constant 0 : index
    %c0_13 = arith.constant 0 : index
    %c0_14 = arith.constant 0 : index
    %13 = vector.load %arg8[%c0_12, %c0_13, %c0_14] : memref<1x2x128xf32, #tpu.memory_space<vmem>>, vector<1x2x128xf32>
    %14 = vector.shape_cast %13 : vector<1x2x128xf32> to vector<2x128xf32>
    %15 = vector.shape_cast %12 : vector<2x128xf32> to vector<1x2x128xf32>
    tpu.vector_store %arg8[%c0_12, %c0_13, %c0_14], %15 {strides = array<i32>} : memref<1x2x128xf32, #tpu.memory_space<vmem>>, vector<1x2x128xf32>,
    %c0_15 = arith.constant 0 : index
    %c0_16 = arith.constant 0 : index
    %c0_17 = arith.constant 0 : index
    %16 = vector.load %arg6[%c0_15, %c0_16, %c0_17] : memref<1x128x128xf32, #tpu.memory_space<vmem>>, vector<1x128x128xf32>
    %17 = vector.shape_cast %16 : vector<1x128x128xf32> to vector<128x128xf32>
    %cst_18 = arith.constant dense<0.000000e+00> : vector<2x128xf32>
    %18 = tpu.matmul %12, %17, %cst_18 {dimension_numbers = #tpu.dot_dimension_numbers<[1], [0], [0], [1], [0, 0, 1, 1], [], []>} : vector<2x128xf32>, vector<128x128xf32>, vector<2x128xf32> -> vector<2x128xf32>
    %c0_19 = arith.constant 0 : index
    %c0_20 = arith.constant 0 : index
    %c0_21 = arith.constant 0 : index
    %19 = vector.load %arg7[%c0_19, %c0_20, %c0_21] : memref<1x1x128xf32, #tpu.memory_space<vmem>>, vector<1x1x128xf32>
    %20 = vector.shape_cast %19 : vector<1x1x128xf32> to vector<1x128xf32>
    %21 = vector.broadcast %20 : vector<1x128xf32> to vector<2x128xf32>
    %22 = arith.addf %18, %21 : vector<2x128xf32>
    %c0_22 = arith.constant 0 : index
    %c0_23 = arith.constant 0 : index
    %c0_24 = arith.constant 0 : index
    %23 = vector.load %arg9[%c0_22, %c0_23, %c0_24] : memref<1x2x128xf32, #tpu.memory_space<vmem>>, vector<1x2x128xf32>
    %24 = vector.shape_cast %23 : vector<1x2x128xf32> to vector<2x128xf32>
    %25 = vector.shape_cast %22 : vector<2x128xf32> to vector<1x2x128xf32>
    tpu.vector_store %arg9[%c0_22, %c0_23, %c0_24], %25 {strides = array<i32>} : memref<1x2x128xf32, #tpu.memory_space<vmem>>, vector<1x2x128xf32>,
    return
  }
  func.func @transform_0(%arg0: i32, %arg1: i32, %arg2: i32) -> (i32, i32, i32, i32) {
    %c0_i32 = arith.constant 0 : i32
    %c0_i32_0 = arith.constant 0 : i32
    return %arg2, %arg0, %arg1, %c0_i32 : i32, i32, i32, i32
  }
  func.func @transform_1(%arg0: i32, %arg1: i32, %arg2: i32) -> (i32, i32, i32) {
    %c1_i32 = arith.constant 1 : i32
    %0 = arith.muli %arg0, %c1_i32 : i32
    %1 = arith.addi %0, %arg1 : i32
    %c0_i32 = arith.constant 0 : i32
    %c0_i32_0 = arith.constant 0 : i32
    %c0_i32_1 = arith.constant 0 : i32
    return %1, %c0_i32, %c0_i32_0 : i32, i32, i32
  }
  func.func @transform_2(%arg0: i32, %arg1: i32, %arg2: i32) -> (i32, i32, i32) {
    %c1_i32 = arith.constant 1 : i32
    %0 = arith.muli %arg0, %c1_i32 : i32
    %1 = arith.addi %0, %arg1 : i32
    %c0_i32 = arith.constant 0 : i32
    %c0_i32_0 = arith.constant 0 : i32
    %c0_i32_1 = arith.constant 0 : i32
    return %1, %c0_i32, %c0_i32_0 : i32, i32, i32
  }
  func.func @transform_3(%arg0: i32, %arg1: i32, %arg2: i32) -> (i32, i32, i32) {
    %c1_i32 = arith.constant 1 : i32
    %0 = arith.muli %arg0, %c1_i32 : i32
    %1 = arith.addi %0, %arg1 : i32
    %c0_i32 = arith.constant 0 : i32
    %c0_i32_0 = arith.constant 0 : i32
    %c0_i32_1 = arith.constant 0 : i32
    return %1, %c0_i32, %c0_i32_0 : i32, i32, i32
  }
  func.func @transform_4(%arg0: i32, %arg1: i32, %arg2: i32) -> (i32, i32, i32) {
    %c1_i32 = arith.constant 1 : i32
    %0 = arith.muli %arg0, %c1_i32 : i32
    %1 = arith.addi %0, %arg1 : i32
    %c0_i32 = arith.constant 0 : i32
    %c0_i32_0 = arith.constant 0 : i32
    %c0_i32_1 = arith.constant 0 : i32
    return %1, %c0_i32, %c0_i32_0 : i32, i32, i32
  }
  func.func @transform_5(%arg0: i32, %arg1: i32, %arg2: i32) -> (i32, i32, i32) {
    %c1_i32 = arith.constant 1 : i32
    %0 = arith.muli %arg0, %c1_i32 : i32
    %1 = arith.addi %0, %arg1 : i32
    %c0_i32 = arith.constant 0 : i32
    %c0_i32_0 = arith.constant 0 : i32
    return %1, %arg2, %c0_i32 : i32, i32, i32
  }
  func.func @transform_6(%arg0: i32, %arg1: i32, %arg2: i32) -> (i32, i32, i32) {
    %c1_i32 = arith.constant 1 : i32
    %0 = arith.muli %arg0, %c1_i32 : i32
    %1 = arith.addi %0, %arg1 : i32
    %c0_i32 = arith.constant 0 : i32
    %c0_i32_0 = arith.constant 0 : i32
    return %1, %arg2, %c0_i32 : i32, i32, i32
  }
}

</mosaic_0001>

<bundles_post_ra>
// kernel: tpu_custom_call.1
= control target key start
LH: loop header
LB: loop body
LE: loop exit
PB: predicated region body
PF: predicated region fallthrough
CT: control target
= control target key end

     0   :  { %s1782_s0 = inlined_call_operand.hbm [shape: bf16[2,12,4,256], index: 0, kind: input, shape index: {}]   ;;  %s1783_s1 = inlined_call_operand.hbm [shape: f32[6,256,128], index: 1, kind: input, shape index: {}]   ;;  %s1784_s2 = inlined_call_operand.hbm [shape: f32[6,1,128], index: 2, kind: input, shape index: {}]   ;;  %s1785_s3 = inlined_call_operand.hbm [shape: f32[6,128,128], index: 3, kind: input, shape index: {}]   ;;  %s1786_s4 = inlined_call_operand.vmem [shape: f32[6,1,128], index: 4, kind: input, shape index: {}]   ;;  %s1787_s5 = inlined_call_operand.hbm [shape: f32[6,2,128], index: 5, kind: output, shape index: {0}]   ;;  %s1788_s6 = inlined_call_operand.hbm [shape: f32[6,2,128], index: 6, kind: output, shape index: {1}]  }
   0x1   :  { %1794 = sst [smem:[#allocation25_spill]] %s1782_s0 }
   0x2   :  { %12 = vsyncpa [#allocation3], 0 }
   0x3   :  { %14 = vsyncpa [#allocation3 + $0x1], 0 }
   0x4   :  { %15 = vsyncpa [#allocation6], 0 }
   0x5   :  { %17 = vsyncpa [#allocation6 + $0x1], 0 }
   0x6   :  { %18 = vsyncpa [#allocation9], 0 }
   0x7   :  { %20 = vsyncpa [#allocation9 + $0x1], 0 }
   0x8   :  { %21 = vsyncpa [#allocation4], 0 }
   0x9   :  { %23 = vsyncpa [#allocation4 + $0x1], 0 }
   0xa   :  { %24 = vsyncpa [#allocation12], 0 }
   0xb   :  { %26 = vsyncpa [#allocation12 + $0x1], 0  ;;  %s1463_s21 = smov 0   ;;  %s1465_s22 = smov 0  }
   0xc   :  { %s1467_s23 = smov 0   ;;  %s1469_s24 = smov 0  }
   0xd   :  { %s1471_s25 = smov 0   ;;  %s1473_s26 = smov 0  }
   0xe LB: > { %1795 = sst [smem:[#allocation21_spill]] %s1399_s23  ;;  %s1494_s27 = sadd.s32 4294967295, %s1411_s26   ;;  %s1411_s26 = sphi %s1473_s26, %s32_s26   ;;  %s1407_s25 = sphi %s1471_s25, %s1813_s25   ;;  %s1403_s24 = sphi %s1469_s24, %s1812_s24   ;;  %s1399_s23 = sphi %s1467_s23, %s1808_s23   ;;  %s1395_s22 = sphi %s1465_s22, %s1811_s22   ;;  %s1391_s21 = sphi %s1463_s21, %s1810_s21  }
   0xf   : > { %s1000_s28 = sadd.s32 4294967294, %s1411_s26   ;;  %s51_s29 = sadd.s32 1, %s1407_s25 }
  0x10   : > { %s62_s30 = sadd.s32 1, %s1399_s23  ;;  %p53_p0 = scmp.ge.s32.totalorder %s51_s29, 6 }
  0x11   : > { %p69_p1 = scmp.ne.s32.totalorder %s1399_s23, %s1395_s22  ;;  %p70_p2 = scmp.eq.s32.totalorder %s1411_s26, 0 }
  0x12   : > { %p75_p3 = scmp.ne.s32.totalorder %s1395_s22, %s1391_s21  ;;  %s1815_s29 = smov (%p53_p0, %s51_s29), 0 }
  0x13   : > { %1796 = sst [smem:[#allocation22_spill]] %s1815_s29  ;;  %p1506_p4 = por %p70_p2, %p69_p1 }
  0x14   : > { %p76_p5 = scmp.eq.s32.totalorder %s1494_s27, 0  ;;  %s56_s8 = ssub.s32 %s1407_s25, %s1815_s29 }
  0x15   : > { %p215_p6 = scmp.eq.s32.totalorder %s1494_s27, 5  ;;  %p60_p7 = scmp.eq.s32.totalorder %s56_s8, 0 }
  0x16   : > { %p1514_p8 = por %p76_p5, %p75_p3  ;;  %p221_p10 = scmp.eq.s32.totalorder %s1000_s28, 5 }
  0x17   : > { %p1518_p9 = por %p215_p6, %p69_p1  ;;  %p1002_p12 = scmp.ge.s32.totalorder %s1411_s26, 6 }
  0x18   : > { %s1523_s11 = scalar_select %p60_p7, %s1399_s23, %s62_s30  }
  0x19   : > { %p1525_p11 = por %p221_p10, %p75_p3  ;;  %267 = sbr.rel (%p1002_p12) target bundleno = 87 (0x57), region = 16 }
  0x1a   : > { %1800 = sst [smem:[#allocation23_spill]] %s1523_s11 }
  0x1b   : > { %s1801_s12 = scalar_select %p1525_p11, 1, 0 }
  0x1d   : > { %1802 = sst [smem:[#allocation24_spill]] %s1801_s12 }
  0x1e   : > { %s1531_s13 = sand.u32 1, %s1399_s23   ;;  %s1031_s14 = sshll.u32 %s1407_s25, 7 }
  0x1f   : > { %s1003_s15 = sshll.u32 %s1531_s13, 4  ;;  %s1803_s0 = sld [smem:[#allocation25_spill]] }
  0x20   : > { %s1130_s19 = scalar_select %p1506_p4, [#allocation0], [#allocation15] }
  0x21   : > { %s275_s20 = scalar_lea.vmem [#allocation2], %s1003_s15  ;;  %s1413_s8 = smov 768  }
  0x22   : > { %s300_s28 = sshll.u32 %s275_s20, 4  ;;  %s292_s30 = sld [smem:[%s1130_s19]]   ;;  %s301_s28 = int_to_ptr.vmem [resolvable:$true] %s300_s28 }
  0x23   : > { %1131 = sst [smem:[#allocation14]] (%p1506_p4), %s1413_s8  ;;  %s1414_s29 = smov 128  }
  0x24   : > { %1132 = sst [smem:[#allocation14 + $0x1]] (%p1506_p4), %s1414_s29  ;;  %s1415_s11 = smov 2  }
  0x25   : > { %s287_s18 = scalar_lea.hbm %s1803_s0, %s1031_s14  ;;  %1133 = sst [smem:[#allocation14 + $0x2]] (%p1506_p4), %s1415_s11 }
  0x26   : > { %s1416_s16 = smov 64   ;;  %s1417_s15 = smov 4  }
  0x27   : > { %1134 = sst [smem:[#allocation14 + $0x3]] (%p1506_p4), %s1416_s16  ;;  %s272_s19 = scalar_lea.sflag [#allocation3], %s1531_s13 }
  0x28   : > { %1135 = sst [smem:[#allocation14 + $0x4]] (%p1506_p4), %s1416_s16  ;;  %s1007_s14 = sshll.u32 %s292_s30, 26 }
  0x29   : > { %1136 = sst [smem:[#allocation14 + $0x5]] (%p1506_p4), %s1417_s15  ;;  %s1008_s17 = sadd.s32 134217728, %s1007_s14 }
  0x2a   : > { %s1418_s20 = smov 131072   ;;  %s323_s29 = sand.u32 1, %s1411_s26  }
  0x2b   : > { %1137 = dma.general (%p1506_p4), %s287_s18, 256, %s301_s28, %s272_s19, %s1418_s20, [#allocation14], %s1008_s17, 0  }
  0x2c   : > { %s1009_s11 = sshll.u32 %s1531_s13, 8  ;;  %s1032_s8 = sshll.u32 %s1407_s25, 12 }
  0x2d   : > { %s327_s0 = scalar_lea.vmem [#allocation5], %s1009_s11  ;;  %s334_s30 = scalar_lea.hbm %s1783_s1, %s1032_s8 }
  0x2e   : > { %s335_s23 = sshll.u32 %s327_s0, 4  ;;  %s1561_s15 = scalar_lea.sflag [#allocation6], %s323_s29  ;;  %s336_s23 = int_to_ptr.vmem [resolvable:$true] %s335_s23 }
  0x2f   : > { %s1227_s14 = scalar_lea.vmem %s336_s23, 4096  ;;  %s1419_s18 = smov [#allocation5]  }
  0x30   : > { %p1228_p13 = scmp.ne.s32.totalorder %s336_s23, %s1227_s14  ;;  %s1231_s28 = sshll.u32 %s1419_s18, 4  ;;  %s1232_s28 = int_to_ptr.vmem [resolvable:$false] %s1231_s28 }
  0x31   : > { %s1233_s17 = scalar_lea.vmem %s1232_s28, 8192  ;;  %p1234_p2 = scmp.lt.s32.totalorder %s336_s23, %s1232_s28 }
  0x32   : > { %p1229_p0 = pnand %p1228_p13, %p1506_p4  ;;  %p1235_p3 = scmp.lt.s32.totalorder %s1233_s17, %s1227_s14 }
  0x34   : > { %p1230_p1 = pneg %p1229_p0  ;;  %p1236_p5 = por %p1235_p3, %p1234_p2 }
  0x36   : > { %p1237_p6 = pnand %p1236_p5, %p1230_p1 }
  0x38   : > { %1240 = shalt.err (!%p1237_p6)
}
  0x39   : > { %s1792_s0 = smov 128   ;;  %s1793_s12 = smov 8  }
  0x3a   : > { %1138 = dma.hbm_to_vmem [thread:$0]  (%p1506_p4), %s334_s30, 4096, %s336_s23, %s1561_s15, %s1792_s0, %s1792_s0, %s1793_s12  }
  0x3b   : > { %s1012_s19 = sshll.u32 %s1407_s25, 4  ;;  %s348_s8 = scalar_lea.vmem [#allocation7], %s1531_s13 }
  0x3c   : > { %s354_s11 = scalar_lea.hbm %s1784_s2, %s1012_s19  ;;  %s356_s16 = sshll.u32 %s348_s8, 4  ;;  %s357_s16 = int_to_ptr.vmem [resolvable:$true] %s356_s16 }
  0x3d   : > { %s1253_s14 = scalar_lea.vmem %s357_s16, 16  ;;  %s1422_s18 = smov [#allocation7]  }
  0x3e   : > { %p1254_p7 = scmp.ne.s32.totalorder %s357_s16, %s1253_s14  ;;  %s1257_s28 = sshll.u32 %s1422_s18, 4  ;;  %s1258_s28 = int_to_ptr.vmem [resolvable:$false] %s1257_s28 }
  0x3f   : > { %s1259_s17 = scalar_lea.vmem %s1258_s28, 32  ;;  %p1260_p13 = scmp.lt.s32.totalorder %s357_s16, %s1258_s28 }
  0x40   : > { %p1255_p10 = pnand %p1254_p7, %p1506_p4  ;;  %p1261_p0 = scmp.lt.s32.totalorder %s1259_s17, %s1253_s14 }
  0x42   : > { %p1256_p12 = pneg %p1255_p10  ;;  %p1262_p1 = por %p1261_p0, %p1260_p13 }
  0x44   : > { %p1263_p2 = pnand %p1262_p1, %p1256_p12 }
  0x46   : > { %1266 = shalt.err (!%p1263_p2)
}
  0x47   : > { %1139 = dma.hbm_to_vmem [thread:$0]  (%p1506_p4), %s354_s11, 16, %s357_s16, %s1561_s15  }
  0x48   : > { %s1013_s23 = sshll.u32 %s1531_s13, 7  ;;  %s1033_s30 = sshll.u32 %s1407_s25, 11 }
  0x49   : > { %s374_s29 = scalar_lea.hbm %s1785_s3, %s1033_s30  ;;  %s367_s8 = scalar_lea.vmem [#allocation8], %s1013_s23 }
  0x4a   : > { %s375_s18 = sshll.u32 %s367_s8, 4  ;;  %s364_s14 = scalar_lea.sflag [#allocation9], %s1531_s13  ;;  %s376_s18 = int_to_ptr.vmem [resolvable:$true] %s375_s18 }
  0x4b   : > { %s1279_s28 = scalar_lea.vmem %s376_s18, 2048  ;;  %s1423_s17 = smov [#allocation8]  }
  0x4c   : > { %p1280_p3 = scmp.ne.s32.totalorder %s376_s18, %s1279_s28  ;;  %s1283_s0 = sshll.u32 %s1423_s17, 4  ;;  %s1284_s0 = int_to_ptr.vmem [resolvable:$false] %s1283_s0 }
  0x4d   : > { %s1285_s12 = scalar_lea.vmem %s1284_s0, 4096  ;;  %p1286_p7 = scmp.lt.s32.totalorder %s376_s18, %s1284_s0 }
  0x4e   : > { %p1281_p5 = pnand %p1280_p3, %p1506_p4  ;;  %p1287_p10 = scmp.lt.s32.totalorder %s1285_s12, %s1279_s28 }
  0x50   : > { %p1282_p6 = pneg %p1281_p5  ;;  %p1288_p12 = por %p1287_p10, %p1286_p7 }
  0x52   : > { %p1289_p13 = pnand %p1288_p12, %p1282_p6 }
  0x54   : > { %1292 = shalt.err (!%p1289_p13)
}
  0x55   : > { %s1804_s15 = smov 8   ;;  %s1805_s11 = smov 128  }
  0x56   : > { %1140 = dma.hbm_to_vmem [thread:$0]  (%p1506_p4), %s374_s29, 2048, %s376_s18, %s364_s14, %s1805_s11, %s1805_s11, %s1804_s15  }
  0x57 PF: > { %p1016_p0 = scmp.ge.s32.totalorder %s1411_s26, 1  ;;  %p391_p1 = scmp.lt.s32.totalorder %s1411_s26, 7 }
  0x59   : > { %p392_p2 = pnand %p1016_p0, %p391_p1 }
  0x5a   : > { %s1597_s13 = sand.u32 (!%p392_p2), 1, %s1395_s22  }
  0x5b   : > { %395 = sbr.rel (%p392_p2) target bundleno = 545 (0x221), region = 40  ;;  %s1017_s0 = sshll.u32 (!%p392_p2), %s1597_s13, 4 }
  0x5c   : > { %s398_s12 = scalar_lea.sflag (!%p392_p2), [#allocation3], %s1597_s13  ;;  %s1601_s7 = scalar_lea.vmem (!%p392_p2), [#allocation2], %s1017_s0 }
  0x60   : > { %1370 = dma.done.wait (%p1514_p8), %s398_s12, 256  }
  0x61   : > { %1372 = vsyncadd (%p1514_p8), %s398_s12, 4294967040  ;;  %s406_s16 = sand.u32 1, %s1494_s27   ;;  %s1018_s23 = sshll.u32 %s1597_s13, 8 }
  0x62   : > { %s407_s30 = scalar_lea.sflag [#allocation6], %s406_s16  ;;  %s1609_s19 = scalar_lea.vmem [#allocation5], %s1018_s23 }
  0x63   : > { %1374 = dma.done.wait (%p1514_p8), %s407_s30, 4112  }
  0x64   : > { %1376 = vsyncadd (%p1514_p8), %s407_s30, 4294963184  ;;  %s1019_s20 = sshll.u32 %s1597_s13, 7  ;;  %s418_s29 = scalar_lea.vmem [#allocation7], %s1597_s13 }
  0x65   : > { %s424_s8 = scalar_lea.sflag [#allocation9], %s1597_s13  ;;  %s1618_s18 = scalar_lea.vmem [#allocation8], %s1019_s20 }
  0x66   : > { %1378 = dma.done.wait (%p1514_p8), %s424_s8, 2048  }
  0x67   : > { %1380 = vsyncadd (%p1514_p8), %s424_s8, 4294965248  ;;  %v1424_v0 = vmov 0.0   ;;  %v583_v1 = vld [vmem:[%s1609_s19 + $0xf8] sm:$0xff]  ;;  %v582_v3 = vld [vmem:[%s1609_s19 + $0xf0] sm:$0xff]  ;;  %vm511_vm0 = vcmask 1043456   ;;  %vm595_vm1 = vcmask 1041409  }
  0x68   : > { %1095 = vmatprep.subr.mxu1 %v1424_v0  ;;  %v567_v2 = vld [vmem:[%s1609_s19 + $0x78] sm:$0xff]  ;;  %1043 = vmatprep.subr.mxu0 %v583_v1  ;;  %v566_v4 = vld [vmem:[%s1609_s19 + $0x70] sm:$0xff]  ;;  %v581_v5 = vld [vmem:[%s1609_s19 + $0xe8] sm:$0xff]  ;;  %vm1425_vm2 = vmmov 0   ;;  %s1020_s27 = sshll.u32 %s1597_s13, 1  ;;  %s1026_s14 = sshll.u32 %s1403_s24, 5 }
  0x69   : > { %1044 = vmatpush3.msra.mxu0 %v567_v2  ;;  %v565_v6 = vld [vmem:[%s1609_s19 + $0x68] sm:$0xff]  ;;  %v580_v7 = vld [vmem:[%s1609_s19 + $0xe0] sm:$0xff]  ;;  %v579_v9 = vld [vmem:[%s1609_s19 + $0xd8] sm:$0xff]  ;;  %1127 = vmatprep.mubr.msk.f32.mxu1 %vm1425_vm2, %v1424_v0  ;;  %s471_s9 = scalar_lea.vmem [#allocation10], %s1020_s27  ;;  %s785_s11 = scalar_lea.hbm %s1787_s5, %s1026_s14 }
  0x6a   : > { %1045 = vmatprep.subr.mxu0 %v582_v3  ;;  %v564_v8 = vld [vmem:[%s1609_s19 + $0x60] sm:$0xff]  ;;  %v563_v10 = vld [vmem:[%s1609_s19 + $0x58] sm:$0xff]  ;;  %v578_v11 = vld [vmem:[%s1609_s19 + $0xd0] sm:$0xff]  ;;  %s787_s28 = sshll.u32 %s471_s9, 4  ;;  %s767_s0 = scalar_lea.sflag [#allocation4], %s1597_s13  ;;  %s788_s28 = int_to_ptr.vmem [resolvable:$true] %s787_s28 }
  0x6b   : > { %1046 = vmatpush3.msra.mxu0 %v566_v4  ;;  %v562_v12 = vld [vmem:[%s1609_s19 + $0x50] sm:$0xff]  ;;  %v577_v13 = vld [vmem:[%s1609_s19 + $0xc8] sm:$0xff]  ;;  %v687_v19 = vld [vmem:[%s1618_s18 + $0x78] sm:$0xff]  ;;  %s1293_s12 = scalar_lea.vmem %s788_s28, 32 }
  0x6c   : > { %1047 = vmatprep.subr.mxu0 %v581_v5  ;;  %v561_v14 = vld [vmem:[%s1609_s19 + $0x48] sm:$0xff]  ;;  %v1035_v15 = vld [vmem:[%s1601_s7] sm:$0xff]   ;;  %1096 = vmatpush3.msra.mxu1 %v687_v19  ;;  %v575_v30 = vld [vmem:[%s1609_s19 + $0xb8] sm:$0xff]  ;;  %p1294_p4 = scmp.ne.s32.totalorder %s788_s28, %s1293_s12 }
  0x6d   : > { %1048 = vmatpush3.msra.mxu0 %v565_v6  ;;  %v1036_v16 = vunpack.c.l.bf16 %v1035_v15  ;;  %v1037_v17 = vunpack.c.h.bf16 %v1035_v15  ;;  %v1042_v18 = vld [vmem:[%s1601_s7 + $0x8] sm:$0xff]   ;;  %v576_v21 = vld [vmem:[%s1609_s19 + $0xc0] sm:$0xff]  ;;  %1097 = vmatprep.subr.mxu1 %v1424_v0  ;;  %v574_v40 = vld [vmem:[%s1609_s19 + $0xb0] sm:$0xff]  ;;  %s1426_s7 = smov [#allocation10]  }
  0x6e   : > { %1049 = vmatprep.subr.mxu0 %v580_v7  ;;  %v686_v20 = vld [vmem:[%s1618_s18 + $0x70] sm:$0xff]  ;;  %v1040_v22 = vunpack.c.l.bf16 %v1042_v18  ;;  %v1041_v23 = vunpack.c.h.bf16 %v1042_v18  ;;  %v560_v24 = vld [vmem:[%s1609_s19 + $0x40] sm:$0xff]  ;;  %v685_v29 = vld [vmem:[%s1618_s18 + $0x68] sm:$0xff]  ;;  %p1295_p8 = pnand %p1294_p4, %p1518_p9  ;;  %s1297_s16 = sshll.u32 %s1426_s7, 4  ;;  %s1298_s16 = int_to_ptr.vmem [resolvable:$false] %s1297_s16 }
  0x6f   : > { %1050 = vmatpush3.msra.mxu0 %v564_v8  ;;  %v503_v25 = vcombine.high %v1036_v16, %v1036_v16  ;;  %v504_v26 = vcombine.high %v1037_v17, %v1037_v17  ;;  %v512_v27 = vsel %vm511_vm0, %v1036_v16, 0.0  ;;  %v513_v28 = vsel %vm511_vm0, %v1037_v17, 0.0  ;;  %1098 = vmatpush3.msra.mxu1 %v686_v20  ;;  %v559_v35 = vld [vmem:[%s1609_s19 + $0x38] sm:$0xff]  ;;  %v684_v39 = vld [vmem:[%s1618_s18 + $0x60] sm:$0xff]  ;;  %v558_v45 = vld [vmem:[%s1609_s19 + $0x30] sm:$0xff]  ;;  %s1299_s23 = scalar_lea.vmem %s1298_s16, 64  ;;  %p1300_p5 = scmp.lt.s32.totalorder %s788_s28, %s1298_s16 }
  0x70   : > { %1051 = vmatprep.subr.mxu0 %v579_v9  ;;  %v505_v31 = vcombine.high %v1040_v22, %v1040_v22  ;;  %v506_v32 = vcombine.high %v1041_v23, %v1041_v23  ;;  %v514_v33 = vadd.f32 %v513_v28, %v512_v27  ;;  %v518_v34 = vsel %vm511_vm0, %v1040_v22, 0.0  ;;  %1099 = vmatprep.subr.mxu1 %v1424_v0  ;;  %v683_v48 = vld [vmem:[%s1618_s18 + $0x58] sm:$0xff]  ;;  %v573_v49 = vld [vmem:[%s1609_s19 + $0xa8] sm:$0xff]  ;;  %v682_v57 = vld [vmem:[%s1618_s18 + $0x50] sm:$0xff]  ;;  %p1296_p3 = pneg %p1295_p8  ;;  %p1301_p6 = scmp.lt.s32.totalorder %s1299_s23, %s1293_s12 }
  0x71   : > { %1052 = vmatpush3.msra.mxu0 %v563_v10  ;;  %v515_v36 = vsel %vm511_vm0, %v503_v25, 0.0  ;;  %v516_v37 = vsel %vm511_vm0, %v504_v26, 0.0  ;;  %v519_v38 = vsel %vm511_vm0, %v1041_v23, 0.0  ;;  %1100 = vmatpush3.msra.mxu1 %v685_v29  ;;  %v557_v53 = vld [vmem:[%s1609_s19 + $0x28] sm:$0xff]  ;;  %v572_v58 = vld [vmem:[%s1609_s19 + $0xa0] sm:$0xff]  ;;  %v571_v2 = vld [vmem:[%s1609_s19 + $0x98] sm:$0xff] }
  0x72   : > { %1053 = vmatprep.subr.mxu0 %v578_v11  ;;  %v517_v41 = vadd.f32 %v516_v37, %v515_v36  ;;  %v521_v42 = vsel %vm511_vm0, %v505_v31, 0.0  ;;  %v522_v43 = vsel %vm511_vm0, %v506_v32, 0.0  ;;  %v520_v44 = vadd.f32 %v519_v38, %v518_v34  ;;  %1101 = vmatprep.subr.mxu1 %v1424_v0  ;;  %v556_v61 = vld [vmem:[%s1609_s19 + $0x20] sm:$0xff]  ;;  %v681_v1 = vld [vmem:[%s1618_s18 + $0x48] sm:$0xff]  ;;  %v555_v5 = vld [vmem:[%s1609_s19 + $0x18] sm:$0xff]  ;;  %p1302_p7 = por %p1301_p6, %p1300_p5 }
  0x73   : > { %1054 = vmatpush3.msra.mxu0 %v562_v12  ;;  %v523_v46 = vadd.f32 %v522_v43, %v521_v42  ;;  %v524_v47 = vsel %vm511_vm0, %v514_v33, 0.0  ;;  %1102 = vmatpush3.msra.mxu1 %v684_v39  ;;  %v680_v8 = vld [vmem:[%s1618_s18 + $0x40] sm:$0xff]  ;;  %v570_v9 = vld [vmem:[%s1609_s19 + $0x90] sm:$0xff]  ;;  %v679_v15 = vld [vmem:[%s1618_s18 + $0x38] sm:$0xff] }
  0x74   : > { %1055 = vmatprep.subr.mxu0 %v577_v13  ;;  %v531_v50 = vsel %vm511_vm0, %v517_v41, 0.0  ;;  %v525_v51 = vrot.slane %v524_v47, 4  ;;  %v538_v52 = vsel %vm511_vm0, %v520_v44, 0.0  ;;  %1103 = vmatprep.subr.mxu1 %v1424_v0  ;;  %v554_v12 = vld [vmem:[%s1609_s19 + $0x10] sm:$0xff]  ;;  %v569_v16 = vld [vmem:[%s1609_s19 + $0x88] sm:$0xff]  ;;  %v568_v23 = vld [vmem:[%s1609_s19 + $0x80] sm:$0xff]  ;;  %p1303_p10 = pnand %p1302_p7, %p1296_p3 }
  0x75   : > { %1056 = vmatpush3.msra.mxu0 %v561_v14  ;;  %v532_v54 = vrot.slane %v531_v50, 4  ;;  %v545_v55 = vsel %vm511_vm0, %v523_v46, 0.0  ;;  %v539_v56 = vrot.slane %v538_v52, 4  ;;  %1104 = vmatpush3.msra.mxu1 %v683_v48  ;;  %v553_v19 = vld [vmem:[%s1609_s19 + $0x8] sm:$0xff]  ;;  %v678_v22 = vld [vmem:[%s1618_s18 + $0x30] sm:$0xff]  ;;  %v552_v26 = vld [vmem:[%s1609_s19] sm:$0xff] }
  0x76   : > { %1057 = vmatprep.subr.mxu0 %v576_v21  ;;  %v546_v59 = vrot.slane %v545_v55, 4  ;;  %v526_v60 = vadd.f32 %v525_v51, %v524_v47  ;;  %1105 = vmatprep.subr.mxu1 %v1424_v0  ;;  %v677_v29 = vld [vmem:[%s1618_s18 + $0x28] sm:$0xff]  ;;  %v676_v33 = vld [vmem:[%s1618_s18 + $0x20] sm:$0xff]  ;;  %v675_v34 = vld [vmem:[%s1618_s18 + $0x18] sm:$0xff] }
  0x77   : > { %1058 = vmatpush3.msra.mxu0 %v560_v24  ;;  %v533_v62 = vadd.f32 %v532_v54, %v531_v50  ;;  %v540_v63 = vadd.f32 %v539_v56, %v538_v52  ;;  %1106 = vmatpush3.msra.mxu1 %v682_v57  ;;  %v673_v36 = vld [vmem:[%s1618_s18 + $0x8] sm:$0xff]  ;;  %v672_v37 = vld [vmem:[%s1618_s18] sm:$0xff]  ;;  %v1022_v39 = vld [vmem:[%s418_s29] ss:$0 sm:$0xff] }
  0x78   : > { %1059 = vmatprep.subr.mxu0 %v575_v30  ;;  %v547_v3 = vadd.f32 %v546_v59, %v545_v55  ;;  %v527_v4 = vrot.slane %v526_v60, 2  ;;  %1107 = vmatprep.subr.mxu1 %v1424_v0 }
  0x79   : > { %1060 = vmatpush3.msra.mxu0 %v559_v35  ;;  %v534_v6 = vrot.slane %v533_v62, 2  ;;  %v541_v7 = vrot.slane %v540_v63, 2  ;;  %1108 = vmatpush3.msra.mxu1 %v681_v1  ;;  %v674_v35 = vld [vmem:[%s1618_s18 + $0x10] sm:$0xff] }
  0x7a   : > { %1061 = vmatprep.subr.mxu0 %v574_v40  ;;  %v548_v10 = vrot.slane %v547_v3, 2  ;;  %v528_v11 = vadd.f32 %v527_v4, %v526_v60  ;;  %1109 = vmatprep.subr.mxu1 %v1424_v0 }
  0x7b   : > { %1062 = vmatpush3.msra.mxu0 %v558_v45  ;;  %v535_v13 = vadd.f32 %v534_v6, %v533_v62  ;;  %v542_v14 = vadd.f32 %v541_v7, %v540_v63  ;;  %1110 = vmatpush3.msra.mxu1 %v680_v8 }
  0x7c   : > { %1063 = vmatprep.subr.mxu0 %v573_v49  ;;  %v549_v17 = vadd.f32 %v548_v10, %v547_v3  ;;  %v529_v18 = vrot.slane %v528_v11, 1  ;;  %1111 = vmatprep.subr.mxu1 %v1424_v0 }
  0x7d   : > { %1064 = vmatpush3.msra.mxu0 %v557_v53  ;;  %v536_v20 = vrot.slane %v535_v13, 1  ;;  %v543_v21 = vrot.slane %v542_v14, 1  ;;  %1112 = vmatpush3.msra.mxu1 %v679_v15 }
  0x7e   : > { %1065 = vmatprep.subr.mxu0 %v572_v58  ;;  %v550_v24 = vrot.slane %v549_v17, 1  ;;  %v530_v25 = vadd.f32 %v529_v18, %v528_v11  ;;  %1113 = vmatprep.subr.mxu1 %v1424_v0 }
  0x7f   : > { %1066 = vmatpush3.msra.mxu0 %v556_v61  ;;  %v537_v27 = vadd.f32 %v536_v20, %v535_v13  ;;  %v544_v28 = vadd.f32 %v543_v21, %v542_v14  ;;  %1114 = vmatpush3.msra.mxu1 %v678_v22 }
  0x80   : > { %1067 = vmatprep.subr.mxu0 %v571_v2  ;;  %v551_v30 = vadd.f32 %v550_v24, %v549_v17  ;;  %1115 = vmatprep.subr.mxu1 %v1424_v0 }
  0x81   : > { %1068 = vmatpush3.msra.mxu0 %v555_v5  ;;  %v596_v31 = vsel %vm595_vm1, %v544_v28, %v530_v25  ;;  %1116 = vmatpush3.msra.mxu1 %v677_v29 }
  0x82   : > { %1069 = vmatprep.subr.mxu0 %v570_v9  ;;  %v597_v32 = vsel %vm595_vm1, %v551_v30, %v537_v27  ;;  %1117 = vmatprep.subr.mxu1 %v1424_v0 }
  0x83   : > { %1070 = vmatpush3.msra.mxu0 %v554_v12  ;;  %664 = vmatprep.mubr.f32.mxu0 %v597_v32 }
  0x84   : > { %1071 = vmatprep.subr.mxu0 %v569_v16  ;;  %1118 = vmatpush3.msra.mxu1 %v676_v33 }
  0x85   : > { %1072 = vmatpush3.msra.mxu0 %v553_v19  ;;  %1119 = vmatprep.subr.mxu1 %v1424_v0 }
  0x86   : > { %1073 = vmatprep.subr.mxu0 %v568_v23  ;;  %1120 = vmatpush3.msra.mxu1 %v675_v34 }
  0x87   : > { %1074 = vmatpush3.msra.mxu0 %v552_v26  ;;  %1121 = vmatprep.subr.mxu1 %v1424_v0 }
  0x88   : > { %665 = vmatmul.mubr.f32.vlgmr.msra.gmra.mxu0 %v596_v31  ;;  %1122 = vmatpush3.msra.mxu1 %v674_v35 }
  0x89   : > { %1123 = vmatprep.subr.mxu1 %v1424_v0 }
  0x8a   : > { %1124 = vmatpush3.msra.mxu1 %v673_v36 }
  0x8b   : > { %1125 = vmatprep.subr.mxu1 %v1424_v0 }
  0x8c   : > { %1126 = vmatpush3.msra.mxu1 %v672_v37 }
 0x148   : > { %v1075_v38 = vpop.f32.mrf.mxu0 }
 0x14a   : > { %v1076_v40 = vpop.f32.mrf.mxu0 }
 0x14b   : > { %v1077_v41 = vadd.f32 %v1076_v40, %v1075_v38 }
 0x14d   : > { %v667_v42 = vadd.f32 %v1077_v41, %v1022_v39 }
 0x14f   : > { %v670_v43 = vmax.f32 %v667_v42, 0.0 }
 0x151   : > { %1128 = vmatmul.mubr.f32.vlgmr.msra.gmra.mxu1 %v670_v43  ;;  %671 = vst [vmem:[%s471_s9] sm:$0x3] %v670_v43 }
 0x152   : > { %1306 = shalt.err (!%p1303_p10)
}
 0x153   : > { %s1307_s30 = scalar_lea.hbm %s785_s11, 32  ;;  %s1311_s29 = scalar_lea.hbm %s1787_s5, 192 }
 0x154   : > { %p1308_p12 = scmp.ne.s32.totalorder %s785_s11, %s1307_s30  ;;  %p1312_p1 = scmp.lt.s32.totalorder %s785_s11, %s1787_s5 }
 0x155   : > { %p1313_p2 = scmp.lt.s32.totalorder %s1311_s29, %s1307_s30 }
 0x156   : > { %p1309_p13 = pnand %p1308_p12, %p1518_p9 }
 0x157   : > { %p1314_p4 = por %p1313_p2, %p1312_p1 }
 0x158   : > { %p1310_p0 = pneg %p1309_p13 }
 0x15a   : > { %p1315_p8 = pnand %p1314_p4, %p1310_p0 }
 0x15c   : > { %1318 = shalt.err (!%p1315_p8)
}
 0x15d   : > { %1145 = dma.vmem_to_hbm [thread:$0]  (%p1518_p9), %s788_s28, 32, %s785_s11, %s767_s0  }
 0x15e   : > { %p485_p3 = scmp.lt.s32.totalorder %s1403_s24, 5  ;;  %s478_s7 = scalar_lea.vmem [#allocation11], %s1020_s27 }
 0x15f   : > { %s802_s16 = sshll.u32 %s478_s7, 4  ;;  %s1741_s19 = scalar_lea.hbm %s1788_s6, %s1026_s14  ;;  %s803_s16 = int_to_ptr.vmem [resolvable:$true] %s802_s16 }
 0x160   : > { %s486_s9 = scalar_select %p485_p3, %s1403_s24, 5 }
 0x161   : > { %s772_s28 = scalar_lea.sflag [#allocation12], %s1597_s13  ;;  %s1319_s11 = scalar_lea.vmem %s803_s16, 32 }
 0x162   : > { %s487_s12 = scalar_lea.vmem %s1786_s4, %s486_s9  ;;  %p1320_p5 = scmp.ne.s32.totalorder %s803_s16, %s1319_s11 }
 0x163   : > { %v1023_v0 = vld [vmem:[%s487_s12] ss:$0 sm:$0xff]  ;;  %s1427_s0 = smov [#allocation11]  }
 0x164   : > { %p1321_p6 = pnand %p1320_p5, %p1518_p9  ;;  %s1323_s27 = sshll.u32 %s1427_s0, 4  ;;  %s1324_s27 = int_to_ptr.vmem [resolvable:$false] %s1323_s27 }
 0x165   : > { %s1325_s20 = scalar_lea.vmem %s1324_s27, 64  ;;  %p1326_p10 = scmp.lt.s32.totalorder %s803_s16, %s1324_s27 }
 0x166   : > { %p1322_p7 = pneg %p1321_p6  ;;  %p1327_p12 = scmp.lt.s32.totalorder %s1325_s20, %s1319_s11 }
 0x168   : > { %p1328_p13 = por %p1327_p12, %p1326_p10 }
 0x16a   : > { %p1329_p0 = pnand %p1328_p13, %p1322_p7 }
 0x211   : > { %v761_v44 = vpop.f32.mrf.mxu1 }
 0x212   : > { %v762_v45 = vadd.f32 %v1023_v0, %v761_v44 }
 0x213   : > { %v1129_v46 = vpop.f32.mrf.mxu1 }
 0x214   : > { %765 = vst [vmem:[%s478_s7] sm:$0x3] %v762_v45 }
 0x215   : > { %1332 = shalt.err (!%p1329_p0)
}
 0x216   : > { %s1333_s24 = scalar_lea.hbm %s1741_s19, 32  ;;  %s1337_s29 = scalar_lea.hbm %s1788_s6, 192 }
 0x217   : > { %p1334_p1 = scmp.ne.s32.totalorder %s1741_s19, %s1333_s24  ;;  %p1338_p8 = scmp.lt.s32.totalorder %s1741_s19, %s1788_s6 }
 0x218   : > { %p1339_p3 = scmp.lt.s32.totalorder %s1337_s29, %s1333_s24 }
 0x219   : > { %p1335_p2 = pnand %p1334_p1, %p1518_p9 }
 0x21a   : > { %p1340_p5 = por %p1339_p3, %p1338_p8 }
 0x21b   : > { %p1336_p4 = pneg %p1335_p2 }
 0x21d   : > { %p1341_p6 = pnand %p1340_p5, %p1336_p4 }
 0x21f   : > { %1344 = shalt.err (!%p1341_p6)
}
 0x220   : > { %1146 = dma.vmem_to_hbm [thread:$0]  (%p1518_p9), %s803_s16, 32, %s1741_s19, %s772_s28  }
 0x221 PF: > { %p1156_p7 = scmp.ge.s32.totalorder %s1411_s26, 2  ;;  %s814_s17 = sand.u32 1, %s1391_s21  }
 0x222   : > { %s815_s15 = scalar_lea.sflag [#allocation4], %s814_s17 }
 0x223   : > { %p1150_p10 = pnand %p1156_p7, %p1525_p11 }
 0x225   : > { %p1151_p12 = pneg %p1150_p10 }
 0x227   : > { %1382 = dma.done.wait (%p1151_p12), %s815_s15, 32  }
 0x228   : > { %1384 = vsyncadd (%p1151_p12), %s815_s15, 4294967264  ;;  %s824_s12 = scalar_lea.sflag [#allocation12], %s814_s17 }
 0x229   : > { %1386 = dma.done.wait (%p1151_p12), %s824_s12, 32  }
 0x22a   : > { %1388 = vsyncadd (%p1151_p12), %s824_s12, 4294967264  ;;  %s32_s26 = sadd.s32 1, %s1411_s26   ;;  %s1807_s10 = sld [smem:[#allocation21_spill]] }
 0x22b   : > { %p29_p13 = scmp.ge.s32.totalorder %s32_s26, 8   ;;  %s1808_s23 = sld [smem:[#allocation23_spill]] }
 0x22c   : > { %s1809_s7 = sld [smem:[#allocation22_spill]]  ;;  %s1810_s21 = smov %s1395_s22 }
 0x22d   : > { %s1812_s24 = smov %s1407_s25 }
 0x22e   :  { %31 = sbr.rel (!%p29_p13) target bundleno = 14 (0xe), region = 147 }
 0x230   : > { %s1811_s22 = smov %s1807_s10 }
 0x232   : > { %s1813_s25 = smov %s1809_s7 }
 0x233   :  { %829 = vsyncpa [#allocation3], 1 }
 0x234   :  { %831 = vsyncpa [#allocation3 + $0x1], 1 }
 0x235   :  { %832 = vsyncpa [#allocation6], 1 }
 0x236   :  { %834 = vsyncpa [#allocation6 + $0x1], 1 }
 0x237   :  { %835 = vsyncpa [#allocation9], 1 }
 0x238   :  { %837 = vsyncpa [#allocation9 + $0x1], 1 }
 0x239   :  { %838 = vsyncpa [#allocation4], 1 }
 0x23a   :  { %840 = vsyncpa [#allocation4 + $0x1], 1 }
 0x23b   :  { %841 = vsyncpa [#allocation12], 1 }
 0x23c   :  { %843 = vsyncpa [#allocation12 + $0x1], 1 }

</bundles_post_ra>
